<compile_context>
chip_gen: v5e
topology: v5e:2x2
jax: 0.10.0
libtpu: 0.0.40
codegen_flags: <defaults>
</compile_context>

<pallas_src>
import functools

import jax
import jax.numpy as jnp
from jax.experimental import pallas as pl
from jax.experimental.pallas import tpu as pltpu

EPSILON = 1e-08
LANE = 128
SUBLANE = 8

# Conservative across generations: v7x has only 64 MiB physical VMEM per core,
# v5e/v6e have 128 MiB but a small scoped default that must be raised anyway.
# Blocks beyond ~2 MiB are already at the HBM roofline, so a 32 MiB block
# budget under a 48 MiB compiler limit is safe and fast on all three chips.
VMEM_LIMIT_BYTES = 48 << 20
BLOCK_BUDGET_BYTES = 32 << 20
MIN_GRID_STEPS = 8  # keep grid steps for megacore sharding / DMA overlap


def _round_up(a, m):
    return (a + m - 1) // m * m


def _round_down(a, m):
    return a // m * m


# ----------------------------------------------------------------------------
# Fused single-pass kernel: one block holds row_tile full spatial rows.
# ----------------------------------------------------------------------------
def _instance_norm_kernel(x_ref, o_ref, *, hw_true):
    # x_ref: (row_tile, hw_pad); each row = one (n, c) instance's pixels,
    # zero-padded up to a multiple of 128 lanes.
    x = x_ref[...].astype(jnp.float32)
    hw_pad = x.shape[-1]
    inv_n = jnp.float32(1.0 / hw_true)

    mean = jnp.sum(x, axis=-1, keepdims=True) * inv_n  # zero pad adds nothing
    xc = x - mean
    if hw_pad == hw_true:
        var = jnp.sum(xc * xc, axis=-1, keepdims=True) * inv_n
    else:
        # Padded lanes hold zeros; (0 - mean)^2 must be masked out of the var.
        lane = jax.lax.broadcasted_iota(jnp.int32, x.shape, dimension=1)
        xc_valid = jnp.where(lane < hw_true, xc, 0.0)
        var = jnp.sum(xc_valid * xc_valid, axis=-1, keepdims=True) * inv_n

    o_ref[...] = (xc * jax.lax.rsqrt(var + EPSILON)).astype(o_ref.dtype)


def _instance_norm_fused(x, block_budget_bytes):
    N, C, H, W = x.shape
    rows, hw = N * C, H * W
    hw_pad = _round_up(hw, LANE)

    dtype_bytes = jnp.dtype(x.dtype).itemsize
    # Per block row: in + out double-buffered (native dtype) + ~2 f32 temps.
    per_row_bytes = hw_pad * (4 * dtype_bytes + 2 * 4)

    # As many rows per block as the VMEM budget allows (multiple of 8)...
    row_tile = max(SUBLANE, _round_down(block_budget_bytes // per_row_bytes, SUBLANE))
    rows_aligned = _round_up(rows, SUBLANE)
    row_tile = min(row_tile, rows_aligned)
    # ...but keep several grid steps so both v7x TensorCores get work and the
    # DMA pipeline has iterations to overlap.
    if rows_aligned // MIN_GRID_STEPS >= SUBLANE:
        row_tile = min(row_tile, _round_down(rows_aligned // MIN_GRID_STEPS, SUBLANE))

    rows_pad = _round_up(rows, row_tile)

    x2d = x.reshape(rows, hw)
    if rows_pad != rows or hw_pad != hw:
        x2d = jnp.pad(x2d, ((0, rows_pad - rows), (0, hw_pad - hw)))

    grid = (rows_pad // row_tile,)
    out2d = pl.pallas_call(
        functools.partial(_instance_norm_kernel, hw_true=hw),
        out_shape=jax.ShapeDtypeStruct((rows_pad, hw_pad), x.dtype),
        grid_spec=pltpu.PrefetchScalarGridSpec(
            num_scalar_prefetch=0,
            grid=grid,
            in_specs=[pl.BlockSpec((row_tile, hw_pad), lambda i: (i, 0))],
            out_specs=pl.BlockSpec((row_tile, hw_pad), lambda i: (i, 0)),
        ),
        compiler_params=pltpu.CompilerParams(
            dimension_semantics=("parallel",),
            vmem_limit_bytes=VMEM_LIMIT_BYTES,
        ),
    )(x2d)

    return out2d[:rows, :hw].reshape(N, C, H, W)


# ----------------------------------------------------------------------------
# Huge-spatial fallback: split HW across an "arbitrary" reduction axis.
# ----------------------------------------------------------------------------
def _stats_kernel(x_ref, mean_ref, rstd_ref, sum_ref, sq_ref, *, inv_n):
    k = pl.program_id(1)

    @pl.when(k == 0)
    def _():
        sum_ref[...] = jnp.zeros_like(sum_ref)
        sq_ref[...] = jnp.zeros_like(sq_ref)

    x = x_ref[...].astype(jnp.float32)
    sum_ref[...] += jnp.sum(x, axis=-1, keepdims=True)
    sq_ref[...] += jnp.sum(x * x, axis=-1, keepdims=True)

    @pl.when(k == pl.num_programs(1) - 1)
    def _():
        mean = sum_ref[...] * inv_n
        # Zero padding contributes nothing to either accumulator, so using the
        # true count is exact. E[x^2] - mean^2 is the price of streaming over
        # HW chunks; accumulation stays in f32, clamp tiny negative residue.
        var = jnp.maximum(sq_ref[...] * inv_n - mean * mean, 0.0)
        mean_ref[...] = mean
        rstd_ref[...] = jax.lax.rsqrt(var + EPSILON)


def _apply_kernel(x_ref, mean_ref, rstd_ref, o_ref):
    x = x_ref[...].astype(jnp.float32)
    o_ref[...] = ((x - mean_ref[...]) * rstd_ref[...]).astype(o_ref.dtype)


def _instance_norm_split(x, block_budget_bytes):
    N, C, H, W = x.shape
    rows, hw = N * C, H * W
    dtype_bytes = jnp.dtype(x.dtype).itemsize

    row_tile = SUBLANE
    per_elem_bytes = 4 * dtype_bytes + 2 * 4
    hw_chunk = _round_down(block_budget_bytes // (row_tile * per_elem_bytes), LANE)
    hw_chunk = max(LANE, min(hw_chunk, _round_up(hw, LANE)))

    rows_pad = _round_up(rows, row_tile)
    hw_pad = _round_up(hw, hw_chunk)

    x2d = x.reshape(rows, hw)
    if rows_pad != rows or hw_pad != hw:
        x2d = jnp.pad(x2d, ((0, rows_pad - rows), (0, hw_pad - hw)))

    n_row_blocks = rows_pad // row_tile
    n_hw_blocks = hw_pad // hw_chunk

    # Pass 1: per-row mean / rstd, streaming HW chunks through VMEM scratch.
    mean, rstd = pl.pallas_call(
        functools.partial(_stats_kernel, inv_n=1.0 / hw),
        out_shape=(
            jax.ShapeDtypeStruct((rows_pad, 1), jnp.float32),
            jax.ShapeDtypeStruct((rows_pad, 1), jnp.float32),
        ),
        grid_spec=pltpu.PrefetchScalarGridSpec(
            num_scalar_prefetch=0,
            grid=(n_row_blocks, n_hw_blocks),
            in_specs=[pl.BlockSpec((row_tile, hw_chunk), lambda i, k: (i, k))],
            out_specs=[
                pl.BlockSpec((row_tile, 1), lambda i, k: (i, 0)),
                pl.BlockSpec((row_tile, 1), lambda i, k: (i, 0)),
            ],
            scratch_shapes=[
                pltpu.VMEM((row_tile, 1), jnp.float32),
                pltpu.VMEM((row_tile, 1), jnp.float32),
            ],
        ),
        compiler_params=pltpu.CompilerParams(
            dimension_semantics=("parallel", "arbitrary"),
            vmem_limit_bytes=VMEM_LIMIT_BYTES,
        ),
    )(x2d)

    # Pass 2: normalize (both grid axes independent -> fully parallel).
    out2d = pl.pallas_call(
        _apply_kernel,
        out_shape=jax.ShapeDtypeStruct((rows_pad, hw_pad), x.dtype),
        grid_spec=pltpu.PrefetchScalarGridSpec(
            num_scalar_prefetch=0,
            grid=(n_row_blocks, n_hw_blocks),
            in_specs=[
                pl.BlockSpec((row_tile, hw_chunk), lambda i, k: (i, k)),
                pl.BlockSpec((row_tile, 1), lambda i, k: (i, 0)),
                pl.BlockSpec((row_tile, 1), lambda i, k: (i, 0)),
            ],
            out_specs=pl.BlockSpec((row_tile, hw_chunk), lambda i, k: (i, k)),
        ),
        compiler_params=pltpu.CompilerParams(
            dimension_semantics=("parallel", "parallel"),
            vmem_limit_bytes=VMEM_LIMIT_BYTES,
        ),
    )(x2d, mean, rstd)

    return out2d[:rows, :hw].reshape(N, C, H, W)


# ----------------------------------------------------------------------------
# Public entry point.
# ----------------------------------------------------------------------------
def instance_norm(x, *, block_budget_bytes=BLOCK_BUDGET_BYTES):
    """x: (N, C, H, W) -> (N, C, H, W), matching torch InstanceNorm (no affine)."""
    N, C, H, W = x.shape
    hw_pad = _round_up(H * W, LANE)
    dtype_bytes = jnp.dtype(x.dtype).itemsize
    per_row_bytes = hw_pad * (4 * dtype_bytes + 2 * 4)

    if per_row_bytes * SUBLANE <= block_budget_bytes:
        return _instance_norm_fused(x, block_budget_bytes)
    # Even an 8-row block of the full spatial extent does not fit the VMEM
    # budget (e.g. >1k x 1k spatial on v7x): two-pass HW-split path.
    return _instance_norm_split(x, block_budget_bytes)


def _reference(x):
    mean = jnp.mean(x, axis=(2, 3), keepdims=True)
    xc = x - mean
    var = jnp.mean(xc * xc, axis=(2, 3), keepdims=True)
    return xc * jax.lax.rsqrt(var + EPSILON)


if __name__ == "__main__":
    key = jax.random.PRNGKey(0)
    x = jax.random.normal(key, (2, 4, 16, 16), dtype=jnp.float32)

    out = jax.block_until_ready(instance_norm(x))
    ref = _reference(x)
    assert out.shape == x.shape
    assert jnp.allclose(out, ref, atol=1e-5, rtol=1e-5), (
        f"max abs err {jnp.max(jnp.abs(out - ref))}"
    )

    # Non-128-multiple spatial size (masked-lane path).
    x_odd = jax.random.normal(jax.random.PRNGKey(1), (2, 3, 7, 7), dtype=jnp.float32)
    out_odd = jax.block_until_ready(instance_norm(x_odd))
    ref_odd = _reference(x_odd)
    assert jnp.allclose(out_odd, ref_odd, atol=1e-5, rtol=1e-5), (
        f"max abs err (odd) {jnp.max(jnp.abs(out_odd - ref_odd))}"
    )

    # Force the huge-spatial split path with a tiny block budget at small shape.
    out_split = jax.block_until_ready(instance_norm(x, block_budget_bytes=1024))
    assert jnp.allclose(out_split, ref, atol=1e-4, rtol=1e-4), (
        f"max abs err (split) {jnp.max(jnp.abs(out_split - ref))}"
    )

    print("KERNEL_OK")
</pallas_src>

<mosaic_0001>
module attributes {stable_mosaic.version = 11 : i64} {
  func.func @_instance_norm_kernel(%arg0: i32, %arg1: memref<8x256xf32, #tpu.memory_space<vmem>>, %arg2: memref<8x256xf32, #tpu.memory_space<vmem>>) attributes {dimension_semantics = [#tpu.dimension_semantics<parallel>], iteration_bounds = array<i64: 1>, scalar_prefetch = 0 : i64, scratch_operands = 0 : i64, tpu.core_type = #tpu.core_type<tc>, window_params = [{transform_indices = @transform_0, window_bounds = array<i64: 8, 256>}, {transform_indices = @transform_1, window_bounds = array<i64: 8, 256>}]} {
    %c0 = arith.constant 0 : index
    %c0_0 = arith.constant 0 : index
    %0 = vector.load %arg1[%c0, %c0_0] : memref<8x256xf32, #tpu.memory_space<vmem>>, vector<8x256xf32>
    %cst = arith.constant dense<0.000000e+00> : vector<8xf32>
    %1 = vector.multi_reduction <add>, %0, %cst [1] : vector<8x256xf32> to vector<8xf32>
    %2 = vector.shape_cast %1 : vector<8xf32> to vector<8x1xf32>
    %cst_1 = arith.constant 3.906250e-03 : f32
    %3 = vector.broadcast %cst_1 : f32 to vector<8x1xf32>
    %4 = arith.mulf %2, %3 : vector<8x1xf32>
    %5 = vector.broadcast %4 : vector<8x1xf32> to vector<8x256xf32>
    %6 = arith.subf %0, %5 : vector<8x256xf32>
    %7 = arith.mulf %6, %6 : vector<8x256xf32>
    %cst_2 = arith.constant dense<0.000000e+00> : vector<8xf32>
    %8 = vector.multi_reduction <add>, %7, %cst_2 [1] : vector<8x256xf32> to vector<8xf32>
    %9 = vector.shape_cast %8 : vector<8xf32> to vector<8x1xf32>
    %cst_3 = arith.constant 3.906250e-03 : f32
    %10 = vector.broadcast %cst_3 : f32 to vector<8x1xf32>
    %11 = arith.mulf %9, %10 : vector<8x1xf32>
    %cst_4 = arith.constant 9.99999993E-9 : f32
    %12 = vector.broadcast %cst_4 : f32 to vector<8x1xf32>
    %13 = arith.addf %11, %12 : vector<8x1xf32>
    %14 = math.rsqrt %13 : vector<8x1xf32>
    %15 = vector.broadcast %14 : vector<8x1xf32> to vector<8x256xf32>
    %16 = arith.mulf %6, %15 : vector<8x256xf32>
    %c0_5 = arith.constant 0 : index
    %c0_6 = arith.constant 0 : index
    %17 = vector.load %arg2[%c0_5, %c0_6] : memref<8x256xf32, #tpu.memory_space<vmem>>, vector<8x256xf32>
    tpu.vector_store %arg2[%c0_5, %c0_6], %16 {strides = array<i32>} : memref<8x256xf32, #tpu.memory_space<vmem>>, vector<8x256xf32>,
    return
  }
  func.func @transform_0(%arg0: i32) -> (i32, i32) {
    %c0_i32 = arith.constant 0 : i32
    %c0_i32_0 = arith.constant 0 : i32
    return %arg0, %c0_i32 : i32, i32
  }
  func.func @transform_1(%arg0: i32) -> (i32, i32) {
    %c0_i32 = arith.constant 0 : i32
    %c0_i32_0 = arith.constant 0 : i32
    return %arg0, %c0_i32 : i32, i32
  }
}

</mosaic_0001>

<bundles_post_ra>
// kernel: tpu_custom_call.1
= control target key start
LH: loop header
LB: loop body
LE: loop exit
PB: predicated region body
PF: predicated region fallthrough
CT: control target
= control target key end

     0   :  { %6 = vsyncpa [#allocation3], 0  ;;  %s143_s0 = inlined_call_operand.hbm [shape: f32[8,256], index: 0, kind: input, shape index: {}]   ;;  %s144_s1 = inlined_call_operand.hbm [shape: f32[8,256], index: 1, kind: output, shape index: {}]  }
   0x1   :  { %7 = vsyncpa [#allocation4], 0  ;;  %s13_s8 = sshll.u32 %s143_s0, 4  ;;  %s125_s9 = smov [#allocation2]   ;;  %s14_s8 = int_to_ptr.hbm [resolvable:$true] %s13_s8 }
   0x2   :  { %s15_s10 = sshll.u32 %s125_s9, 4  ;;  %s16_s10 = int_to_ptr.vmem [resolvable:$true] %s15_s10 }
   0x3   :  { %18 = dma.hbm_to_vmem [thread:$0]  %s14_s8, 256, %s16_s10, [#allocation3]  }
   0x4   :  { %121 = dma.done.wait [#allocation3], 256  }
   0x5   :  { %122 = vsyncadd [#allocation3], 4294967040  ;;  %v23_v0 = vld [vmem:[#allocation2] sm:$0xff]  ;;  %v24_v1 = vld [vmem:[#allocation2 + $0x8] sm:$0xff]  ;;  %s126_s0 = smov [#allocation5]   ;;  %s59_s14 = sshll.u32 %s144_s1, 4  ;;  %s60_s14 = int_to_ptr.hbm [resolvable:$true] %s59_s14 }
   0x6   :  { %v25_v2 = vadd.f32 %v24_v1, %v23_v0  ;;  %s57_s11 = sshll.u32 %s126_s0, 4  ;;  %s58_s11 = int_to_ptr.vmem [resolvable:$true] %s57_s11 }
   0x8   :  { %26 = vadd.xlane.f32.xlu0 %v25_v2 }
  0x7b   :  { %v27_v3 = vpop.xlane.xlu0 %26 }
  0x7c   :  { %v28_v4 = vmul.f32 0.00390625, %v27_v3 }
  0x7e   :  { %v29_v5 = vsub.f32 %v23_v0, %v28_v4  ;;  %v30_v6 = vsub.f32 %v24_v1, %v28_v4 }
  0x80   :  { %v31_v7 = vmul.f32 %v29_v5, %v29_v5  ;;  %v32_v8 = vmul.f32 %v30_v6, %v30_v6 }
  0x82   :  { %v33_v9 = vadd.f32 %v32_v8, %v31_v7 }
  0x84   :  { %34 = vadd.xlane.f32.xlu0 %v33_v9 }
  0xf7   :  { %v35_v10 = vpop.xlane.xlu0 %34 }
  0xf8   :  { %v36_v11 = vmul.f32 0.00390625, %v35_v10 }
  0xfa   :  { %v37_v12 = vadd.f32 1e-08, %v36_v11 }
  0xfc   :  { %71 = vrsqrt.f32 %v37_v12  ;;  %vm44_vm1 = vweird.f32 %v37_v12 }
 0x102   :  { %v72_v13 = vpop.eup %71 }
 0x103   :  { %v39_v14 = vmul.f32 %v72_v13, %v37_v12  ;;  %vm45_vm0 = vweird.f32 %v72_v13 }
 0x104   :  { %vm46_vm2 = vmor %vm44_vm1, %vm45_vm0 }
 0x105   :  { %v40_v15 = vmul.f32 %v72_v13, %v39_v14 }
 0x107   :  { %v41_v16 = vmul.f32 0.5, %v40_v15 }
 0x109   :  { %v42_v17 = vsub.f32 1.5, %v41_v16 }
 0x10b   :  { %v43_v18 = vmul.f32 %v72_v13, %v42_v17 }
 0x10d   :  { %v47_v19 = vsel %vm46_vm2, %v72_v13, %v43_v18 }
 0x10e   :  { %v48_v20 = vmul.f32 %v47_v19, %v29_v5  ;;  %v49_v21 = vmul.f32 %v47_v19, %v30_v6 }
 0x110   :  { %50 = vst [vmem:[#allocation5] sm:$0xff] %v48_v20 }
 0x111   :  { %51 = vst [vmem:[#allocation5 + $0x8] sm:$0xff] %v49_v21 }
 0x112   :  { %62 = dma.vmem_to_hbm [thread:$0]  %s58_s11, 256, %s60_s14, [#allocation4]  }
 0x113   :  { %123 = dma.done.wait [#allocation4], 256  }
 0x114   :  { %124 = vsyncadd [#allocation4], 4294967040 }
 0x115   :  { %67 = vsyncpa [#allocation3], 1 }
 0x116   :  { %68 = vsyncpa [#allocation4], 1 }

</bundles_post_ra>
